<compile_context>
chip_gen: v5e
topology: v5e:2x2
jax: 0.10.0
libtpu: 0.0.40
codegen_flags: <defaults>
</compile_context>

<pallas_src>
import jax
import jax.numpy as jnp
from jax import lax
from jax.experimental import pallas as pl
from jax.experimental.pallas import tpu as pltpu

EPS = 1e-5      # PyTorch GroupNorm default
LANES = 128


def _fusion_gn_kernel(le_ref, re_ref, fa_ref, gamma_ref, beta_ref, o_ref):
    """One batch element.

    le/re/fa_ref : (1, rows, 128)   one branch == one GroupNorm group
    gamma_ref    : (3, rows, 1)     per-row affine scale (channel-expanded)
    beta_ref     : (3, rows, 1)     per-row affine shift
    o_ref        : (1, 3, rows, 128)
    """
    rows = le_ref.shape[1]
    n = rows * le_ref.shape[2]
    inv_n = jnp.float32(1.0 / n)

    branches = (le_ref, re_ref, fa_ref)
    for g, ref in enumerate(branches):            # static unroll over the 3 groups
        x = ref[0].astype(jnp.float32)            # (rows, 128)

        # Single-pass mean / variance over the whole group.
        s = jnp.sum(x, keepdims=True)             # (1, 1)
        s2 = jnp.sum(x * x, keepdims=True)        # (1, 1)
        mean = s * inv_n
        var = s2 * inv_n - mean * mean
        inv_std = lax.rsqrt(var + EPS)            # (1, 1)

        gam = gamma_ref[g].astype(jnp.float32)    # (rows, 1), static index
        bet = beta_ref[g].astype(jnp.float32)     # (rows, 1)

        scale = inv_std * gam                     # (rows, 1)
        shift = bet - mean * scale                # (rows, 1)

        o_ref[0, g] = (x * scale + shift).astype(o_ref.dtype)


def feature_fusion(left_eye, right_eye, face, gamma, beta, num_groups=3):
    """Equivalent of FeatureFusion.forward: cat along channels + GroupNorm(3, C)."""
    assert num_groups == 3, "FeatureFusion fuses exactly 3 branches (one per group)"
    assert left_eye.shape == right_eye.shape == face.shape
    B, cpg, H, W = left_eye.shape
    G = num_groups
    HW = H * W
    # TODO(synk): bf16 inputs would want (16,128)-shaped tiles; this path assumes f32.
    assert HW % LANES == 0, "H*W must be a multiple of 128 for the lane-dense layout"
    rows_per_ch = HW // LANES
    rows = cpg * rows_per_ch                       # sublane rows per group block

    # Lane-dense views (contiguous reshapes -> no data movement).
    le = left_eye.reshape(B, rows, LANES)
    re = right_eye.reshape(B, rows, LANES)
    fa = face.reshape(B, rows, LANES)

    # Expand per-channel affine params to per-row (tiny, one-off).
    gamma_rows = jnp.repeat(gamma.reshape(G, cpg), rows_per_ch, axis=1).reshape(G, rows, 1)
    beta_rows = jnp.repeat(beta.reshape(G, cpg), rows_per_ch, axis=1).reshape(G, rows, 1)

    out = pl.pallas_call(
        _fusion_gn_kernel,
        out_shape=jax.ShapeDtypeStruct((B, G, rows, LANES), left_eye.dtype),
        grid_spec=pltpu.PrefetchScalarGridSpec(
            num_scalar_prefetch=0,
            grid=(B,),
            in_specs=[
                pl.BlockSpec((1, rows, LANES), lambda b: (b, 0, 0)),
                pl.BlockSpec((1, rows, LANES), lambda b: (b, 0, 0)),
                pl.BlockSpec((1, rows, LANES), lambda b: (b, 0, 0)),
                pl.BlockSpec((G, rows, 1), lambda b: (0, 0, 0)),
                pl.BlockSpec((G, rows, 1), lambda b: (0, 0, 0)),
            ],
            out_specs=pl.BlockSpec((1, G, rows, LANES), lambda b: (b, 0, 0, 0)),
        ),
        compiler_params=pltpu.CompilerParams(
            dimension_semantics=("parallel",)),
    )(le, re, fa, gamma_rows, beta_rows)

    # (B, G, rows, 128) is bit-identical in memory to (B, C, H, W).
    return out.reshape(B, G * cpg, H, W)


if __name__ == "__main__":
    key = jax.random.PRNGKey(0)
    k1, k2, k3 = jax.random.split(key, 3)

    # Small shapes consistent with the module: each branch contributes C/3 channels.
    B, ch_each, H, W = 2, 4, 16, 16
    total_ch = 3 * ch_each                      # GroupNorm(3, total_ch)

    left_eye = jax.random.normal(k1, (B, ch_each, H, W), jnp.float32)
    right_eye = jax.random.normal(k2, (B, ch_each, H, W), jnp.float32)
    face = jax.random.normal(k3, (B, ch_each, H, W), jnp.float32)

    # Deterministic affine parameters (PyTorch inits weight=1, bias=0; perturb
    # deterministically so the affine path is actually exercised).
    gamma = 1.0 + 0.05 * jnp.arange(total_ch, dtype=jnp.float32)
    beta = -0.02 * jnp.arange(total_ch, dtype=jnp.float32)

    out = feature_fusion(left_eye, right_eye, face, gamma, beta)
    out = jax.block_until_ready(out)

    # Pure-JAX reference for correctness.
    x = jnp.concatenate((left_eye, right_eye, face), axis=1)
    xr = x.reshape(B, 3, ch_each, H * W)
    mean = xr.mean(axis=(2, 3), keepdims=True)
    var = ((xr - mean) ** 2).mean(axis=(2, 3), keepdims=True)
    ref = ((xr - mean) / jnp.sqrt(var + EPS)).reshape(B, total_ch, H, W)
    ref = ref * gamma[None, :, None, None] + beta[None, :, None, None]

    assert out.shape == (B, total_ch, H, W)
    assert jnp.allclose(out, ref, atol=1e-4, rtol=1e-4)
    print("KERNEL_OK")
</pallas_src>

<mosaic_0001>
module attributes {stable_mosaic.version = 11 : i64} {
  func.func @_fusion_gn_kernel(%arg0: i32, %arg1: memref<1x8x128xf32, #tpu.memory_space<vmem>>, %arg2: memref<1x8x128xf32, #tpu.memory_space<vmem>>, %arg3: memref<1x8x128xf32, #tpu.memory_space<vmem>>, %arg4: memref<3x8x1xf32, #tpu.memory_space<vmem>>, %arg5: memref<3x8x1xf32, #tpu.memory_space<vmem>>, %arg6: memref<1x3x8x128xf32, #tpu.memory_space<vmem>>) attributes {dimension_semantics = [#tpu.dimension_semantics<parallel>], iteration_bounds = array<i64: 2>, scalar_prefetch = 0 : i64, scratch_operands = 0 : i64, tpu.core_type = #tpu.core_type<tc>, window_params = [{transform_indices = @transform_0, window_bounds = array<i64: 1, 8, 128>}, {transform_indices = @transform_1, window_bounds = array<i64: 1, 8, 128>}, {transform_indices = @transform_2, window_bounds = array<i64: 1, 8, 128>}, {pipeline_mode = #tpu.pipeline_mode<synchronous>, transform_indices = @transform_3, window_bounds = array<i64: 3, 8, 1>}, {pipeline_mode = #tpu.pipeline_mode<synchronous>, transform_indices = @transform_4, window_bounds = array<i64: 3, 8, 1>}, {transform_indices = @transform_5, window_bounds = array<i64: 1, 3, 8, 128>}]} {
    %c0 = arith.constant 0 : index
    %c0_0 = arith.constant 0 : index
    %c0_1 = arith.constant 0 : index
    %0 = vector.load %arg1[%c0, %c0_0, %c0_1] : memref<1x8x128xf32, #tpu.memory_space<vmem>>, vector<1x8x128xf32>
    %1 = vector.shape_cast %0 : vector<1x8x128xf32> to vector<8x128xf32>
    %2 = vector.shape_cast %1 : vector<8x128xf32> to vector<1x8x128xf32>
    %cst = arith.constant dense<0.000000e+00> : vector<1xf32>
    %3 = vector.multi_reduction <add>, %2, %cst [1, 2] : vector<1x8x128xf32> to vector<1xf32>
    %4 = vector.shape_cast %3 : vector<1xf32> to vector<1x1x1xf32>
    %5 = vector.extract %4[0, 0, 0] : f32 from vector<1x1x1xf32>
    %6 = vector.broadcast %5 : f32 to vector<1x1xf32>
    %7 = arith.mulf %1, %1 : vector<8x128xf32>
    %8 = vector.shape_cast %7 : vector<8x128xf32> to vector<1x8x128xf32>
    %cst_2 = arith.constant dense<0.000000e+00> : vector<1xf32>
    %9 = vector.multi_reduction <add>, %8, %cst_2 [1, 2] : vector<1x8x128xf32> to vector<1xf32>
    %10 = vector.shape_cast %9 : vector<1xf32> to vector<1x1x1xf32>
    %11 = vector.extract %10[0, 0, 0] : f32 from vector<1x1x1xf32>
    %12 = vector.broadcast %11 : f32 to vector<1x1xf32>
    %cst_3 = arith.constant 9.765625E-4 : f32
    %13 = vector.broadcast %cst_3 : f32 to vector<1x1xf32>
    %14 = arith.mulf %6, %13 : vector<1x1xf32>
    %cst_4 = arith.constant 9.765625E-4 : f32
    %15 = vector.broadcast %cst_4 : f32 to vector<1x1xf32>
    %16 = arith.mulf %12, %15 : vector<1x1xf32>
    %17 = arith.mulf %14, %14 : vector<1x1xf32>
    %18 = arith.subf %16, %17 : vector<1x1xf32>
    %cst_5 = arith.constant 9.99999974E-6 : f32
    %19 = vector.broadcast %cst_5 : f32 to vector<1x1xf32>
    %20 = arith.addf %18, %19 : vector<1x1xf32>
    %21 = math.rsqrt %20 : vector<1x1xf32>
    %c0_6 = arith.constant 0 : index
    %c0_7 = arith.constant 0 : index
    %c0_8 = arith.constant 0 : index
    %22 = vector.load %arg4[%c0_6, %c0_7, %c0_8] : memref<3x8x1xf32, #tpu.memory_space<vmem>>, vector<1x8x1xf32>
    %23 = vector.shape_cast %22 : vector<1x8x1xf32> to vector<8x1xf32>
    %c0_9 = arith.constant 0 : index
    %c0_10 = arith.constant 0 : index
    %c0_11 = arith.constant 0 : index
    %24 = vector.load %arg5[%c0_9, %c0_10, %c0_11] : memref<3x8x1xf32, #tpu.memory_space<vmem>>, vector<1x8x1xf32>
    %25 = vector.shape_cast %24 : vector<1x8x1xf32> to vector<8x1xf32>
    %26 = vector.broadcast %21 : vector<1x1xf32> to vector<8x1xf32>
    %27 = arith.mulf %26, %23 : vector<8x1xf32>
    %28 = vector.broadcast %14 : vector<1x1xf32> to vector<8x1xf32>
    %29 = arith.mulf %28, %27 : vector<8x1xf32>
    %30 = arith.subf %25, %29 : vector<8x1xf32>
    %31 = vector.broadcast %27 : vector<8x1xf32> to vector<8x128xf32>
    %32 = arith.mulf %1, %31 : vector<8x128xf32>
    %33 = vector.broadcast %30 : vector<8x1xf32> to vector<8x128xf32>
    %34 = arith.addf %32, %33 : vector<8x128xf32>
    %c0_12 = arith.constant 0 : index
    %c0_13 = arith.constant 0 : index
    %c0_14 = arith.constant 0 : index
    %c0_15 = arith.constant 0 : index
    %35 = vector.load %arg6[%c0_12, %c0_13, %c0_14, %c0_15] : memref<1x3x8x128xf32, #tpu.memory_space<vmem>>, vector<1x1x8x128xf32>
    %36 = vector.shape_cast %35 : vector<1x1x8x128xf32> to vector<8x128xf32>
    %37 = vector.shape_cast %34 : vector<8x128xf32> to vector<1x1x8x128xf32>
    tpu.vector_store %arg6[%c0_12, %c0_13, %c0_14, %c0_15], %37 {strides = array<i32>} : memref<1x3x8x128xf32, #tpu.memory_space<vmem>>, vector<1x1x8x128xf32>,
    %c0_16 = arith.constant 0 : index
    %c0_17 = arith.constant 0 : index
    %c0_18 = arith.constant 0 : index
    %38 = vector.load %arg2[%c0_16, %c0_17, %c0_18] : memref<1x8x128xf32, #tpu.memory_space<vmem>>, vector<1x8x128xf32>
    %39 = vector.shape_cast %38 : vector<1x8x128xf32> to vector<8x128xf32>
    %40 = vector.shape_cast %39 : vector<8x128xf32> to vector<1x8x128xf32>
    %cst_19 = arith.constant dense<0.000000e+00> : vector<1xf32>
    %41 = vector.multi_reduction <add>, %40, %cst_19 [1, 2] : vector<1x8x128xf32> to vector<1xf32>
    %42 = vector.shape_cast %41 : vector<1xf32> to vector<1x1x1xf32>
    %43 = vector.extract %42[0, 0, 0] : f32 from vector<1x1x1xf32>
    %44 = vector.broadcast %43 : f32 to vector<1x1xf32>
    %45 = arith.mulf %39, %39 : vector<8x128xf32>
    %46 = vector.shape_cast %45 : vector<8x128xf32> to vector<1x8x128xf32>
    %cst_20 = arith.constant dense<0.000000e+00> : vector<1xf32>
    %47 = vector.multi_reduction <add>, %46, %cst_20 [1, 2] : vector<1x8x128xf32> to vector<1xf32>
    %48 = vector.shape_cast %47 : vector<1xf32> to vector<1x1x1xf32>
    %49 = vector.extract %48[0, 0, 0] : f32 from vector<1x1x1xf32>
    %50 = vector.broadcast %49 : f32 to vector<1x1xf32>
    %cst_21 = arith.constant 9.765625E-4 : f32
    %51 = vector.broadcast %cst_21 : f32 to vector<1x1xf32>
    %52 = arith.mulf %44, %51 : vector<1x1xf32>
    %cst_22 = arith.constant 9.765625E-4 : f32
    %53 = vector.broadcast %cst_22 : f32 to vector<1x1xf32>
    %54 = arith.mulf %50, %53 : vector<1x1xf32>
    %55 = arith.mulf %52, %52 : vector<1x1xf32>
    %56 = arith.subf %54, %55 : vector<1x1xf32>
    %cst_23 = arith.constant 9.99999974E-6 : f32
    %57 = vector.broadcast %cst_23 : f32 to vector<1x1xf32>
    %58 = arith.addf %56, %57 : vector<1x1xf32>
    %59 = math.rsqrt %58 : vector<1x1xf32>
    %c1 = arith.constant 1 : index
    %c0_24 = arith.constant 0 : index
    %c0_25 = arith.constant 0 : index
    %60 = vector.load %arg4[%c1, %c0_24, %c0_25] : memref<3x8x1xf32, #tpu.memory_space<vmem>>, vector<1x8x1xf32>
    %61 = vector.shape_cast %60 : vector<1x8x1xf32> to vector<8x1xf32>
    %c1_26 = arith.constant 1 : index
    %c0_27 = arith.constant 0 : index
    %c0_28 = arith.constant 0 : index
    %62 = vector.load %arg5[%c1_26, %c0_27, %c0_28] : memref<3x8x1xf32, #tpu.memory_space<vmem>>, vector<1x8x1xf32>
    %63 = vector.shape_cast %62 : vector<1x8x1xf32> to vector<8x1xf32>
    %64 = vector.broadcast %59 : vector<1x1xf32> to vector<8x1xf32>
    %65 = arith.mulf %64, %61 : vector<8x1xf32>
    %66 = vector.broadcast %52 : vector<1x1xf32> to vector<8x1xf32>
    %67 = arith.mulf %66, %65 : vector<8x1xf32>
    %68 = arith.subf %63, %67 : vector<8x1xf32>
    %69 = vector.broadcast %65 : vector<8x1xf32> to vector<8x128xf32>
    %70 = arith.mulf %39, %69 : vector<8x128xf32>
    %71 = vector.broadcast %68 : vector<8x1xf32> to vector<8x128xf32>
    %72 = arith.addf %70, %71 : vector<8x128xf32>
    %c0_29 = arith.constant 0 : index
    %c1_30 = arith.constant 1 : index
    %c0_31 = arith.constant 0 : index
    %c0_32 = arith.constant 0 : index
    %73 = vector.load %arg6[%c0_29, %c1_30, %c0_31, %c0_32] : memref<1x3x8x128xf32, #tpu.memory_space<vmem>>, vector<1x1x8x128xf32>
    %74 = vector.shape_cast %73 : vector<1x1x8x128xf32> to vector<8x128xf32>
    %75 = vector.shape_cast %72 : vector<8x128xf32> to vector<1x1x8x128xf32>
    tpu.vector_store %arg6[%c0_29, %c1_30, %c0_31, %c0_32], %75 {strides = array<i32>} : memref<1x3x8x128xf32, #tpu.memory_space<vmem>>, vector<1x1x8x128xf32>,
    %c0_33 = arith.constant 0 : index
    %c0_34 = arith.constant 0 : index
    %c0_35 = arith.constant 0 : index
    %76 = vector.load %arg3[%c0_33, %c0_34, %c0_35] : memref<1x8x128xf32, #tpu.memory_space<vmem>>, vector<1x8x128xf32>
    %77 = vector.shape_cast %76 : vector<1x8x128xf32> to vector<8x128xf32>
    %78 = vector.shape_cast %77 : vector<8x128xf32> to vector<1x8x128xf32>
    %cst_36 = arith.constant dense<0.000000e+00> : vector<1xf32>
    %79 = vector.multi_reduction <add>, %78, %cst_36 [1, 2] : vector<1x8x128xf32> to vector<1xf32>
    %80 = vector.shape_cast %79 : vector<1xf32> to vector<1x1x1xf32>
    %81 = vector.extract %80[0, 0, 0] : f32 from vector<1x1x1xf32>
    %82 = vector.broadcast %81 : f32 to vector<1x1xf32>
    %83 = arith.mulf %77, %77 : vector<8x128xf32>
    %84 = vector.shape_cast %83 : vector<8x128xf32> to vector<1x8x128xf32>
    %cst_37 = arith.constant dense<0.000000e+00> : vector<1xf32>
    %85 = vector.multi_reduction <add>, %84, %cst_37 [1, 2] : vector<1x8x128xf32> to vector<1xf32>
    %86 = vector.shape_cast %85 : vector<1xf32> to vector<1x1x1xf32>
    %87 = vector.extract %86[0, 0, 0] : f32 from vector<1x1x1xf32>
    %88 = vector.broadcast %87 : f32 to vector<1x1xf32>
    %cst_38 = arith.constant 9.765625E-4 : f32
    %89 = vector.broadcast %cst_38 : f32 to vector<1x1xf32>
    %90 = arith.mulf %82, %89 : vector<1x1xf32>
    %cst_39 = arith.constant 9.765625E-4 : f32
    %91 = vector.broadcast %cst_39 : f32 to vector<1x1xf32>
    %92 = arith.mulf %88, %91 : vector<1x1xf32>
    %93 = arith.mulf %90, %90 : vector<1x1xf32>
    %94 = arith.subf %92, %93 : vector<1x1xf32>
    %cst_40 = arith.constant 9.99999974E-6 : f32
    %95 = vector.broadcast %cst_40 : f32 to vector<1x1xf32>
    %96 = arith.addf %94, %95 : vector<1x1xf32>
    %97 = math.rsqrt %96 : vector<1x1xf32>
    %c2 = arith.constant 2 : index
    %c0_41 = arith.constant 0 : index
    %c0_42 = arith.constant 0 : index
    %98 = vector.load %arg4[%c2, %c0_41, %c0_42] : memref<3x8x1xf32, #tpu.memory_space<vmem>>, vector<1x8x1xf32>
    %99 = vector.shape_cast %98 : vector<1x8x1xf32> to vector<8x1xf32>
    %c2_43 = arith.constant 2 : index
    %c0_44 = arith.constant 0 : index
    %c0_45 = arith.constant 0 : index
    %100 = vector.load %arg5[%c2_43, %c0_44, %c0_45] : memref<3x8x1xf32, #tpu.memory_space<vmem>>, vector<1x8x1xf32>
    %101 = vector.shape_cast %100 : vector<1x8x1xf32> to vector<8x1xf32>
    %102 = vector.broadcast %97 : vector<1x1xf32> to vector<8x1xf32>
    %103 = arith.mulf %102, %99 : vector<8x1xf32>
    %104 = vector.broadcast %90 : vector<1x1xf32> to vector<8x1xf32>
    %105 = arith.mulf %104, %103 : vector<8x1xf32>
    %106 = arith.subf %101, %105 : vector<8x1xf32>
    %107 = vector.broadcast %103 : vector<8x1xf32> to vector<8x128xf32>
    %108 = arith.mulf %77, %107 : vector<8x128xf32>
    %109 = vector.broadcast %106 : vector<8x1xf32> to vector<8x128xf32>
    %110 = arith.addf %108, %109 : vector<8x128xf32>
    %c0_46 = arith.constant 0 : index
    %c2_47 = arith.constant 2 : index
    %c0_48 = arith.constant 0 : index
    %c0_49 = arith.constant 0 : index
    %111 = vector.load %arg6[%c0_46, %c2_47, %c0_48, %c0_49] : memref<1x3x8x128xf32, #tpu.memory_space<vmem>>, vector<1x1x8x128xf32>
    %112 = vector.shape_cast %111 : vector<1x1x8x128xf32> to vector<8x128xf32>
    %113 = vector.shape_cast %110 : vector<8x128xf32> to vector<1x1x8x128xf32>
    tpu.vector_store %arg6[%c0_46, %c2_47, %c0_48, %c0_49], %113 {strides = array<i32>} : memref<1x3x8x128xf32, #tpu.memory_space<vmem>>, vector<1x1x8x128xf32>,
    return
  }
  func.func @transform_0(%arg0: i32) -> (i32, i32, i32) {
    %c0_i32 = arith.constant 0 : i32
    %c0_i32_0 = arith.constant 0 : i32
    %c0_i32_1 = arith.constant 0 : i32
    return %arg0, %c0_i32, %c0_i32_0 : i32, i32, i32
  }
  func.func @transform_1(%arg0: i32) -> (i32, i32, i32) {
    %c0_i32 = arith.constant 0 : i32
    %c0_i32_0 = arith.constant 0 : i32
    %c0_i32_1 = arith.constant 0 : i32
    return %arg0, %c0_i32, %c0_i32_0 : i32, i32, i32
  }
  func.func @transform_2(%arg0: i32) -> (i32, i32, i32) {
    %c0_i32 = arith.constant 0 : i32
    %c0_i32_0 = arith.constant 0 : i32
    %c0_i32_1 = arith.constant 0 : i32
    return %arg0, %c0_i32, %c0_i32_0 : i32, i32, i32
  }
  func.func @transform_3(%arg0: i32) -> (i32, i32, i32) {
    %c0_i32 = arith.constant 0 : i32
    %c0_i32_0 = arith.constant 0 : i32
    %c0_i32_1 = arith.constant 0 : i32
    %c0_i32_2 = arith.constant 0 : i32
    return %c0_i32, %c0_i32_0, %c0_i32_1 : i32, i32, i32
  }
  func.func @transform_4(%arg0: i32) -> (i32, i32, i32) {
    %c0_i32 = arith.constant 0 : i32
    %c0_i32_0 = arith.constant 0 : i32
    %c0_i32_1 = arith.constant 0 : i32
    %c0_i32_2 = arith.constant 0 : i32
    return %c0_i32, %c0_i32_0, %c0_i32_1 : i32, i32, i32
  }
  func.func @transform_5(%arg0: i32) -> (i32, i32, i32, i32) {
    %c0_i32 = arith.constant 0 : i32
    %c0_i32_0 = arith.constant 0 : i32
    %c0_i32_1 = arith.constant 0 : i32
    %c0_i32_2 = arith.constant 0 : i32
    return %arg0, %c0_i32, %c0_i32_0, %c0_i32_1 : i32, i32, i32, i32
  }
}

</mosaic_0001>

<bundles_post_ra>
// kernel: tpu_custom_call.1
= control target key start
LH: loop header
LB: loop body
LE: loop exit
PB: predicated region body
PF: predicated region fallthrough
CT: control target
= control target key end

     0   :  { %10 = vsyncpa [#allocation3], 0  ;;  %s832_s0 = inlined_call_operand.vmem [shape: f32[2,8,128], index: 0, kind: input, shape index: {}]   ;;  %s833_s1 = inlined_call_operand.vmem [shape: f32[2,8,128], index: 1, kind: input, shape index: {}]   ;;  %s834_s2 = inlined_call_operand.vmem [shape: f32[2,8,128], index: 2, kind: input, shape index: {}]   ;;  %s835_s3 = inlined_call_operand.vmem [shape: f32[3,8,1], index: 3, kind: input, shape index: {}]   ;;  %s836_s4 = inlined_call_operand.vmem [shape: f32[3,8,1], index: 4, kind: input, shape index: {}]   ;;  %s837_s5 = inlined_call_operand.hbm [shape: f32[2,3,8,128], index: 5, kind: output, shape index: {}]  }
   0x1   :  { %12 = vsyncpa [#allocation3 + $0x1], 0  ;;  %s705_s18 = smov 0   ;;  %s707_s19 = smov 0  }
   0x2   :  { %s709_s20 = smov 0   ;;  %s711_s21 = smov 0  }
   0x3 LB: > { %s726_s22 = sadd.s32 4294967295, %s670_s21   ;;  %s527_s23 = sadd.s32 4294967294, %s670_s21   ;;  %s670_s21 = sphi %s711_s21, %s843_s21   ;;  %s666_s20 = sphi %s709_s20, %s842_s20   ;;  %s662_s19 = sphi %s707_s19, %s841_s19   ;;  %s658_s18 = sphi %s705_s18, %s840_s18  }
   0x4   : > { %s730_s24 = sadd.s32 1, %s670_s21   ;;  %s145_s25 = sadd.s32 1, %s666_s20 }
   0x5   : > { %s142_s26 = ssub.s32 %s670_s21, %s730_s24  ;;  %p155_p0 = scmp.ne.s32.totalorder %s666_s20, %s662_s19 }
   0x6   : > { %p143_p1 = scmp.eq.s32.totalorder %s142_s26, 0  ;;  %p156_p2 = scmp.eq.s32.totalorder %s726_s22, 1 }
   0x7   : > { %p161_p3 = scmp.ne.s32.totalorder %s662_s19, %s658_s18  ;;  %p162_p4 = scmp.eq.s32.totalorder %s527_s23, 1 }
   0x8   : > { %s741_s27 = scalar_select %p143_p1, %s666_s20, %s145_s25  }
   0x9   : > { %p743_p5 = por %p156_p2, %p155_p0  ;;  %p747_p6 = por %p162_p4, %p161_p3 }
   0xa   : > { %p530_p7 = scmp.ge.s32.totalorder %s670_s21, 1  ;;  %p207_p8 = scmp.lt.s32.totalorder %s670_s21, 3 }
   0xc   : > { %p208_p9 = pnand %p530_p7, %p207_p8 }
   0xd   : > { %p242_p10 = scmp.lt.s32.totalorder (!%p208_p9), %s726_s22, 1 }
   0xe   : > { %211 = sbr.rel (%p208_p9) target bundleno = 373 (0x175), region = 40 }
  0x13   : > { %s243_s30 = scalar_select %p242_p10, %s726_s22, 1  ;;  %v672_v49 = vmov 0  }
  0x14   : > { %599 = vset.pattern.permute.xlu0 %v672_v49  ;;  %600 = vset.pattern.permute.xlu2 %v672_v49 }
  0x15   : > { %s531_s6 = sshll.u32 %s243_s30, 3  ;;  %601 = vset.pattern.permute.xlu1 %v672_v49 }
  0x16   : > { %s249_s9 = scalar_lea.vmem %s833_s1, %s531_s6  ;;  %s245_s12 = scalar_lea.vmem %s832_s0, %s531_s6 }
  0x17   : > { %v761_v0 = vld [vmem:[%s249_s9] sm:$0xff]  ;;  %s253_s15 = scalar_lea.vmem %s834_s2, %s531_s6 }
  0x18   : > { %v763_v1 = vld [vmem:[%s245_s12] sm:$0xff]  ;;  %310 = vadd.xlane.f32.xlu1 %v761_v0  ;;  %v320_v3 = vmul.f32 %v761_v0, %v761_v0 }
  0x19   : > { %255 = vadd.xlane.f32.xlu0 %v763_v1  ;;  %v770_v2 = vld [vmem:[%s253_s15] sm:$0xff]  ;;  %v265_v4 = vmul.f32 %v763_v1, %v763_v1  ;;  %s628_s15 = scalar_lea.hbm %s837_s5, 48 }
  0x1a   : > { %368 = vadd.xlane.f32.xlu2 %v770_v2  ;;  %v378_v5 = vmul.f32 %v770_v2, %v770_v2 }
  0x20   : > { %321 = vadd.xlane.f32.xlu1 %v320_v3 }
  0x21   : > { %266 = vadd.xlane.f32.xlu0 %v265_v4 }
  0x22   : > { %379 = vadd.xlane.f32.xlu2 %v378_v5 }
  0x8b   : > { %v311_v6 = vpop.xlane.xlu1 %310 }
  0x8c   : > { %v256_v7 = vpop.xlane.xlu0 %255  ;;  %v312_v8 = vrot.slane %v311_v6, 4 }
  0x8d   : > { %v257_v9 = vrot.slane %v256_v7, 4  ;;  %v369_v10 = vpop.xlane.xlu2 %368 }
  0x8e   : > { %v370_v11 = vrot.slane %v369_v10, 4  ;;  %v313_v13 = vadd.f32 %v312_v8, %v311_v6 }
  0x8f   : > { %v258_v12 = vadd.f32 %v257_v9, %v256_v7 }
  0x90   : > { %v371_v15 = vadd.f32 %v370_v11, %v369_v10  ;;  %v314_v17 = vrot.slane %v313_v13, 2 }
  0x91   : > { %v259_v14 = vrot.slane %v258_v12, 2 }
  0x92   : > { %v372_v24 = vrot.slane %v371_v15, 2  ;;  %v315_v30 = vadd.f32 %v314_v17, %v313_v13 }
  0x93   : > { %v260_v16 = vadd.f32 %v259_v14, %v258_v12  ;;  %v322_v18 = vpop.xlane.xlu1 %321 }
  0x94   : > { %v267_v19 = vpop.xlane.xlu0 %266  ;;  %v323_v20 = vrot.slane %v322_v18, 4  ;;  %v373_v34 = vadd.f32 %v372_v24, %v371_v15  ;;  %v316_v37 = vrot.slane %v315_v30, 1 }
  0x95   : > { %v268_v21 = vrot.slane %v267_v19, 4  ;;  %v380_v22 = vpop.xlane.xlu2 %379  ;;  %v261_v23 = vrot.slane %v260_v16, 1 }
  0x96   : > { %v381_v25 = vrot.slane %v380_v22, 4  ;;  %v324_v26 = vadd.f32 %v323_v20, %v322_v18  ;;  %v374_v41 = vrot.slane %v373_v34, 1  ;;  %v317_v45 = vadd.f32 %v316_v37, %v315_v30  ;;  %v292_v30 = vld [vmem:[%s836_s4] sm:$0xff]  ;;  %v535_v37 = vld [vmem:[%s836_s4 + $0x8] sm:$0xff] }
  0x97   : > { %v269_v27 = vadd.f32 %v268_v21, %v267_v19  ;;  %v262_v28 = vadd.f32 %v261_v23, %v260_v16 }
  0x98   : > { %v382_v29 = vadd.f32 %v381_v25, %v380_v22  ;;  %v325_v31 = vrot.slane %v324_v26, 2  ;;  %v375_v47 = vadd.f32 %v374_v41, %v373_v34  ;;  %v291_v22 = vld [vmem:[%s835_s3] sm:$0xff] }
  0x99   : > { %v270_v32 = vrot.slane %v269_v27, 2  ;;  %544 = vpush %v262_v28 }
  0x9a   : > { %v383_v33 = vrot.slane %v382_v29, 2  ;;  %v326_v36 = vadd.f32 %v325_v31, %v324_v26 }
  0x9b   : > { %v271_v35 = vadd.f32 %v270_v32, %v269_v27 }
  0x9c   : > { %v384_v38 = vadd.f32 %v383_v33, %v382_v29  ;;  %v327_v40 = vrot.slane %v326_v36, 1  ;;  %v534_v29 = vld [vmem:[%s835_s3 + $0x8] sm:$0xff] }
  0x9d   : > { %v272_v39 = vrot.slane %v271_v35, 1 }
  0x9e   : > { %v385_v42 = vrot.slane %v384_v38, 1  ;;  %v328_v44 = vadd.f32 %v327_v40, %v326_v36 }
  0x9f   : > { %v273_v43 = vadd.f32 %v272_v39, %v271_v35  ;;  %v537_v39 = vld [vmem:[%s835_s3 + $0x10] sm:$0xff] }
  0xa0   : > { %v386_v46 = vadd.f32 %v385_v42, %v384_v38 }
  0xa1   : > { %546 = vpush %v273_v43  ;;  %v538_v43 = vld [vmem:[%s836_s4 + $0x10] sm:$0xff] }
  0xa2   : > { %548 = vpush %v317_v45 }
  0xa3   : > { %550 = vpush %v328_v44 }
  0xa4   : > { %552 = vpush %v375_v47 }
  0xa5   : > { %554 = vpush %v386_v46 }
  0xca   : > { %s545_s16 = spop %544 }
  0xcb   : > { %v264_v48 = vstv %s545_s16 }
  0xcc   : > { %v276_v50 = vmul.f32 0.0009765625, %v264_v48 }
  0xce   : > { %v278_v52 = vmul.f32 %v276_v50, %v276_v50 }
  0xd2   : > { %s547_s17 = spop %546 }
  0xd3   : > { %v275_v51 = vstv %s547_s17  ;;  %s549_s23 = spop %548 }
  0xd4   : > { %v277_v53 = vmul.f32 0.0009765625, %v275_v51  ;;  %v319_v54 = vstv %s549_s23  ;;  %s551_s25 = spop %550  ;;  %s239_s23 = sand.u32 1, %s662_s19  }
  0xd5   : > { %v331_v55 = vmul.f32 0.0009765625, %v319_v54  ;;  %v330_v56 = vstv %s551_s25  ;;  %s553_s26 = spop %552  ;;  %s543_s25 = smul.u32 24, %s239_s23 }
  0xd6   : > { %v279_v57 = vsub.f32 %v277_v53, %v278_v52  ;;  %v332_v58 = vmul.f32 0.0009765625, %v330_v56  ;;  %v377_v59 = vstv %s553_s26  ;;  %s555_s30 = spop %554  ;;  %s426_s11 = scalar_lea.sflag [#allocation3], %s239_s23 }
  0xd7   : > { %v333_v60 = vmul.f32 %v331_v55, %v331_v55  ;;  %v389_v61 = vmul.f32 0.0009765625, %v377_v59  ;;  %v388_v62 = vstv %s555_s30  ;;  %s241_s26 = scalar_lea.vmem [#allocation2], %s543_s25  ;;  %s556_s30 = smul.u32 24, %s726_s22 }
  0xd8   : > { %v280_v63 = vadd.f32 1e-05, %v279_v57  ;;  %v390_v3 = vmul.f32 0.0009765625, %v388_v62  ;;  %s438_s9 = sshll.u32 %s241_s26, 4  ;;  %s439_s9 = int_to_ptr.vmem [resolvable:$true] %s438_s9 }
  0xd9   : > { %v334_v4 = vsub.f32 %v332_v58, %v333_v60  ;;  %v391_v5 = vmul.f32 %v389_v61, %v389_v61  ;;  %s437_s8 = scalar_lea.hbm %s837_s5, %s556_s30 }
  0xda   : > { %602 = vrsqrt.f32 %v280_v63  ;;  %vm287_vm1 = vweird.f32 %v280_v63  ;;  %s440_s10 = sshll.u32 %s437_s8, 4  ;;  %s441_s10 = int_to_ptr.hbm [resolvable:$true] %s440_s10 }
  0xdb   : > { %v335_v6 = vadd.f32 1e-05, %v334_v4  ;;  %v392_v7 = vsub.f32 %v390_v3, %v391_v5  ;;  %s622_s12 = sshra.s32 %s441_s10, 4  ;;  %s623_s12 = int_to_ptr.hbm [resolvable:$true] %s622_s12 }
  0xdc   : > { %s624_s22 = scalar_lea.hbm %s623_s12, 24  ;;  %p629_p0 = scmp.lt.s32.totalorder %s623_s12, %s837_s5 }
  0xdd   : > { %604 = vrsqrt.f32 %v335_v6  ;;  %v393_v8 = vadd.f32 1e-05, %v392_v7  ;;  %vm342_vm4 = vweird.f32 %v335_v6  ;;  %p625_p11 = scmp.ne.s32.totalorder %s623_s12, %s624_s22  ;;  %p630_p1 = scmp.lt.s32.totalorder %s628_s15, %s624_s22 }
  0xdf   : > { %606 = vrsqrt.f32 %v393_v8  ;;  %vm400_vm7 = vweird.f32 %v393_v8  ;;  %p626_p12 = pnand %p625_p11, %p743_p5  ;;  %p631_p2 = por %p630_p1, %p629_p0 }
  0xe0   : > { %v603_v9 = vpop.eup %602 }
  0xe1   : > { %v282_v10 = vmul.f32 %v603_v9, %v280_v63  ;;  %vm288_vm0 = vweird.f32 %v603_v9  ;;  %p627_p13 = pneg %p626_p12 }
  0xe2   : > { %vm289_vm2 = vmor %vm287_vm1, %vm288_vm0 }
  0xe3   : > { %v605_v11 = vpop.eup %604  ;;  %v283_v12 = vmul.f32 %v603_v9, %v282_v10  ;;  %p632_p3 = pnand %p631_p2, %p627_p13 }
  0xe4   : > { %v337_v13 = vmul.f32 %v605_v11, %v335_v6  ;;  %vm343_vm3 = vweird.f32 %v605_v11 }
  0xe5   : > { %v607_v14 = vpop.eup %606  ;;  %v284_v15 = vmul.f32 0.5, %v283_v12  ;;  %vm344_vm5 = vmor %vm342_vm4, %vm343_vm3 }
  0xe6   : > { %v338_v16 = vmul.f32 %v605_v11, %v337_v13  ;;  %v395_v17 = vmul.f32 %v607_v14, %v393_v8  ;;  %vm401_vm6 = vweird.f32 %v607_v14 }
  0xe7   : > { %v285_v18 = vsub.f32 1.5, %v284_v15  ;;  %vm402_vm8 = vmor %vm400_vm7, %vm401_vm6 }
  0xe8   : > { %v339_v19 = vmul.f32 0.5, %v338_v16  ;;  %v396_v20 = vmul.f32 %v607_v14, %v395_v17 }
  0xe9   : > { %v286_v21 = vmul.f32 %v603_v9, %v285_v18 }
  0xea   : > { %v340_v23 = vsub.f32 1.5, %v339_v19  ;;  %v397_v24 = vmul.f32 0.5, %v396_v20 }
  0xeb   : > { %v290_v25 = vsel %vm289_vm2, %v603_v9, %v286_v21 }
  0xec   : > { %v398_v26 = vsub.f32 1.5, %v397_v24  ;;  %v293_v27 = vmul.f32 %v291_v22, %v290_v25  ;;  %v341_v28 = vmul.f32 %v605_v11, %v340_v23 }
  0xee   : > { %298 = vperm.xlu0 %599, %v293_v27   ;;  %v345_v31 = vsel %vm344_vm5, %v605_v11, %v341_v28  ;;  %v294_v32 = vmul.f32 %v293_v27, %v276_v50  ;;  %v399_v35 = vmul.f32 %v607_v14, %v398_v26 }
  0xef   : > { %v350_v33 = vmul.f32 %v534_v29, %v345_v31 }
  0xf0   : > { %v295_v34 = vsub.f32 %v292_v30, %v294_v32  ;;  %v403_v38 = vsel %vm402_vm8, %v607_v14, %v399_v35 }
  0xf1   : > { %355 = vperm.xlu2 %600, %v350_v33   ;;  %v351_v36 = vmul.f32 %v350_v33, %v331_v55  ;;  %v408_v41 = vmul.f32 %v537_v39, %v403_v38 }
  0xf2   : > { %304 = vperm.xlu1 %601, %v295_v34  }
  0xf3   : > { %v352_v40 = vsub.f32 %v535_v37, %v351_v36  ;;  %v409_v42 = vmul.f32 %v408_v41, %v389_v61 }
  0xf5   : > { %v410_v44 = vsub.f32 %v538_v43, %v409_v42 }
  0xf9   : > { %361 = vperm.xlu2 %600, %v352_v40  }
  0xfa   : > { %413 = vperm.xlu1 %601, %v408_v41  }
 0x101   : > { %419 = vperm.xlu2 %600, %v410_v44  }
 0x14b   : > { %v356_v45 = vpop.permute.xlu2 %355 }
 0x14c   : > { %v358_v46 = vmul.f32 %v356_v45, %v761_v0 }
 0x153   : > { %v362_v47 = vpop.permute.xlu2 %361 }
 0x154   : > { %v364_v48 = vadd.f32 %v362_v47, %v358_v46 }
 0x156   : > { %536 = vst [vmem:[%s241_s26 + $0x8] sm:$0xff] %v364_v48 }
 0x15b   : > { %v420_v54 = vpop.permute.xlu2 %419 }
 0x160   : > { %v299_v49 = vpop.permute.xlu0 %298 }
 0x161   : > { %v301_v50 = vmul.f32 %v299_v49, %v763_v1 }
 0x164   : > { %v305_v51 = vpop.permute.xlu1 %304 }
 0x165   : > { %v307_v52 = vadd.f32 %v305_v51, %v301_v50 }
 0x167   : > { %308 = vst [vmem:[%s241_s26] sm:$0xff] %v307_v52 }
 0x16c   : > { %v414_v53 = vpop.permute.xlu1 %413 }
 0x16d   : > { %v416_v0 = vmul.f32 %v414_v53, %v770_v2 }
 0x16f   : > { %v422_v55 = vadd.f32 %v420_v54, %v416_v0 }
 0x171   : > { %539 = vst [vmem:[%s241_s26 + $0x10] sm:$0xff] %v422_v55 }
 0x172   : > { %635 = shalt.err (!%p632_p3)
}
 0x173   : > { %s673_s23 = smov 128   ;;  %s674_s25 = smov 8  }
 0x174   : > { %557 = dma.vmem_to_hbm [thread:$0]  (%p743_p5), %s439_s9, 384, %s441_s10, %s426_s11, %s673_s23, %s673_s23, %s674_s25  }
 0x175 PF: > { %p563_p4 = scmp.ge.s32.totalorder %s670_s21, 2  ;;  %s455_s26 = sand.u32 1, %s658_s18  }
 0x176   : > { %s456_s30 = scalar_lea.sflag [#allocation3], %s455_s26 }
 0x177   : > { %p560_p7 = pnand %p563_p4, %p747_p6 }
 0x179   : > { %p561_p8 = pneg %p560_p7 }
 0x17b   : > { %653 = dma.done.wait (%p561_p8), %s456_s30, 384  }
 0x17c   : > { %655 = vsyncadd (%p561_p8), %s456_s30, 4294966912  ;;  %p15_p9 = scmp.ge.s32.totalorder %s730_s24, 4   ;;  %s840_s18 = smov %s662_s19 }
 0x17d   : > { %s841_s19 = smov %s666_s20  ;;  %s842_s20 = smov %s741_s27 }
 0x17e   : > { %s843_s21 = smov %s730_s24  ;;  %17 = sbr.rel (!%p15_p9) target bundleno = 3 (0x3), region = 87 }
 0x183   :  { %462 = vsyncpa [#allocation3], 1 }
 0x184   :  { %464 = vsyncpa [#allocation3 + $0x1], 1 }

</bundles_post_ra>
